<compile_context>
chip_gen: v5e
topology: v5e:2x2
jax: 0.10.0
libtpu: 0.0.40
codegen_flags: <defaults>
</compile_context>

<pallas_src>
import functools
import math

import jax
import jax.numpy as jnp
import numpy as np
from jax.experimental import pallas as pl
from jax.experimental.pallas import tpu as pltpu


def _mha_kernel(*refs, H, D, Dp, HD, Tq, compute_dtype, mask_rank, return_attn):
    """One invocation handles one q tile of one batch element.

    Grid = (batch, q_tile).  NOTE (correctness): the persistent fused-QKV
    scratch is filled at qi == 0 and reused by later q tiles, so the q-tile
    axis MUST remain the innermost, sequentially iterated ("arbitrary") grid
    axis.  Do not reorder the grid or mark the q axis "parallel" without
    removing the scratch-resident projection.

    refs (in order):
      x_ref:    (1, S, D)        full-sequence input block (resident per batch)
      mask_ref: (Tq, S)/(1,Tq,S) [only if mask_rank] additive mask, already *-1e9
      wqkv_ref: (D, 3*HD)        fused [wq*scale | wk | wv] (pre-transposed)
      bqkv_ref: (1, 3*HD)        fused biases (fp32)
      wd_ref:   (HD, Dp)         output-projection weight (pre-transposed, padded)
      bd_ref:   (1, Dp)          output-projection bias (fp32, padded)
      out_ref:  (1, Tq, Dp)      output tile (lane-dense)
      attn_ref: (1, H, Tq, S)    [only if return_attn] attention-weights tile
      qkv_ref:  (S, 3*HD)        VMEM scratch, persistent across q tiles
    """
    i = 0
    x_ref = refs[i]; i += 1
    mask_ref = None
    if mask_rank:
        mask_ref = refs[i]; i += 1
    wqkv_ref, bqkv_ref, wd_ref, bd_ref = refs[i:i + 4]; i += 4
    out_ref = refs[i]; i += 1
    attn_ref = None
    if return_attn:
        attn_ref = refs[i]; i += 1
    qkv_ref = refs[i]

    qi = pl.program_id(1)

    # Fused QKV projection (scale folded into the Q columns) for the whole
    # sequence of this batch element; done once, kept resident in VMEM.
    @pl.when(qi == 0)
    def _():
        x = x_ref[0].astype(compute_dtype)                        # (S, D)
        qkv = jnp.dot(x, wqkv_ref[...],
                      preferred_element_type=jnp.float32)         # (S, 3*HD)
        qkv_ref[...] = (qkv + bqkv_ref[...]).astype(qkv_ref.dtype)

    q_start = pl.multiple_of(qi * Tq, Tq)

    add_mask = None
    if mask_rank == 2:
        add_mask = mask_ref[...]            # (Tq, S), already * -1e9, fp32
    elif mask_rank == 3:
        add_mask = mask_ref[0]              # (Tq, S)

    out_acc = jnp.zeros((Tq, Dp), jnp.float32)
    # Static head loop: heads are static lane slices of the packed (S, H*D)
    # projections -- no split-heads/concat-heads relayouts.  Summing per-head
    # partial dense products == concat_heads + dense.
    # TODO(synk): for D not a multiple of 128 the per-head lane slices are not
    # 128-aligned (sub-register operands); with D a multiple of 128 (typical
    # production head dims) they are aligned automatically.
    for h in range(H):
        q_h = qkv_ref[pl.ds(q_start, Tq), pl.ds(h * D, D)]        # (Tq, D)
        k_h = qkv_ref[:, pl.ds(HD + h * D, D)]                    # (S, D)
        v_h = qkv_ref[:, pl.ds(2 * HD + h * D, D)]                # (S, D)

        # scores = (q / sqrt(D)) @ k^T  (scale already folded into wq)
        scores = jax.lax.dot_general(
            q_h, k_h, (((1,), (1,)), ((), ())),
            preferred_element_type=jnp.float32)                   # (Tq, S)
        if add_mask is not None:
            scores = scores + add_mask

        # Numerically stable softmax, always fp32 (v5e has no bf16 VPU/EUP).
        m = jnp.max(scores, axis=-1, keepdims=True)
        e = jnp.exp(scores - m)
        denom = jnp.sum(e, axis=-1, keepdims=True)

        if return_attn:
            # Exact normalization for the user-visible attention weights.
            w = e * (1.0 / denom)                                  # (Tq, S)
            attn_ref[0, h, :, :] = w.astype(attn_ref.dtype)
            ctx = jnp.dot(w.astype(compute_dtype), v_h,
                          preferred_element_type=jnp.float32)      # (Tq, D)
        else:
            # Deferred normalization: scale the (Tq, D) context instead of the
            # (Tq, S) weights; approximate reciprocal rides the EUP slot.
            ctx = jnp.dot(e.astype(compute_dtype), v_h,
                          preferred_element_type=jnp.float32)      # (Tq, D)
            ctx = ctx * pl.reciprocal(denom, approx=True)

        out_acc = out_acc + jnp.dot(
            ctx.astype(compute_dtype), wd_ref[pl.ds(h * D, D), :],
            preferred_element_type=jnp.float32)

    out_ref[0] = (out_acc + bd_ref[...]).astype(out_ref.dtype)


def multihead_attention(x, params, *, D, H, mask=None, q_block=None,
                        compute_dtype=jnp.bfloat16,
                        attn_dtype=jnp.float32,
                        return_attention_weights=True):
    """Forward pass matching MultiheadAttention.forward.

    x:      (B, S, D)
    params: PyTorch nn.Linear layout -- wq/wk/wv: (H*D, D), bq/bk/bv: (H*D,),
            wd: (D, H*D), bd: (D,)
    mask:   optional additive mask, (S, S), (B, S, S) or (B, 1, S, S)
            (broadcast over heads); scores get `mask * -1e9` added.
    Returns (output (B, S, D), attention_weights (B, H, S, S) or None).
    """
    B, S, Din = x.shape
    assert Din == D, "module uses the same D for model dim and head dim"
    HD = H * D
    scale = 1.0 / math.sqrt(D)
    # Lane-dense output: pad the dense-projection output dim to a multiple of
    # 128 so output-tile stores are unmasked; sliced off in the wrapper.
    Dp = D if D % 128 == 0 else ((D + 127) // 128) * 128

    # PyTorch Linear computes y = x @ W.T + b -> pre-transpose, fuse q|k|v and
    # fold the 1/sqrt(D) score scale into the Q columns/bias.  Weights kept in
    # compute_dtype (bf16 default: MXU-native everywhere, half the VMEM).
    wqkv_t = jnp.concatenate(
        [params['wq'].T * scale, params['wk'].T, params['wv'].T],
        axis=1).astype(compute_dtype)                              # (D, 3*HD)
    bqkv = jnp.concatenate(
        [params['bq'] * scale, params['bk'], params['bv']]
    ).reshape(1, 3 * HD).astype(jnp.float32)
    wd_t = params['wd'].T                                          # (HD, D)
    bd = params['bd']
    if Dp != D:
        wd_t = jnp.pad(wd_t, ((0, 0), (0, Dp - D)))
        bd = jnp.pad(bd, (0, Dp - D))
    wd_t = wd_t.astype(compute_dtype)
    bd = bd.reshape(1, Dp).astype(jnp.float32)

    # Optional additive mask: pre-multiplied by -1e9 here (no in-kernel VPU
    # multiply) and NOT broadcast over batch in HBM.
    mask_rank = 0
    mask_arr = None
    if mask is not None:
        m = jnp.asarray(mask, jnp.float32)
        if m.ndim == 4 and m.shape[1] == 1:
            m = m[:, 0]
        if m.ndim == 2 and m.shape == (S, S):
            mask_rank = 2
        elif m.ndim == 3 and m.shape == (B, S, S):
            mask_rank = 3
        else:
            # TODO(synk): per-head (B, H, S, S) masks are not wired into the
            # kernel; only head-broadcast masks are supported.
            raise NotImplementedError("mask must be (S, S), (B, S, S) or (B, 1, S, S)")
        mask_arr = m * (-1e9)

    # Per-generation VMEM budget (v5e/v6e ~128 MiB, v7x ~64 MiB) with pipeline
    # headroom; Tq shrinks automatically until the footprint fits.
    try:
        vmem_cap = int(pltpu.get_tpu_info().vmem_capacity_bytes)
    except Exception:
        vmem_cap = 64 * 1024 * 1024
    vmem_cap = min(max(vmem_cap, 16 * 1024 * 1024), 128 * 1024 * 1024)
    budget = (vmem_cap * 7) // 8

    cb = jnp.dtype(compute_dtype).itemsize
    xb = jnp.dtype(x.dtype).itemsize
    ab = jnp.dtype(attn_dtype).itemsize

    def footprint(tq):
        f = S * 3 * HD * cb                    # persistent fused-QKV scratch
        f += S * 3 * HD * 4                    # fp32 projection temp (qi == 0)
        f += 2 * S * D * xb                    # x block (double-buffered)
        f += 2 * (D * 3 * HD + HD * Dp) * cb   # weight blocks (double-buffered)
        f += 2 * (3 * HD + Dp) * 4             # bias blocks
        f += 2 * tq * Dp * xb                  # output block
        if return_attention_weights:
            f += 2 * H * tq * S * ab           # attention-weights block
        if mask_rank:
            f += 2 * tq * S * 4                # mask block
        f += 4 * tq * S * 4 + 2 * tq * Dp * 4  # per-head fp32 temporaries
        return f

    if q_block is not None:
        if S % q_block != 0:
            raise ValueError(f"q_block={q_block} must divide S={S}")
        Tq = q_block
    elif S % 8 != 0:
        Tq = S        # (8,128) rule: non-8-divisible S must use the full dim
    else:
        # 256 fills the v6e/v7x 256-wide MXU; 512 allowed on the output-only
        # path when VMEM permits; falls through to smaller tiles otherwise.
        max_tq = 256 if return_attention_weights else 512
        cands = [c for c in (512, 256, 128, 64, 32, 16, 8)
                 if c <= max_tq and c <= S and S % c == 0]
        Tq = cands[-1] if cands else S
        for c in cands:
            if footprint(c) <= budget:
                Tq = c
                break
    nq = S // Tq
    # TODO(synk): for very long S (>=4K) the full-S-resident QKV scratch can
    # exceed v7x's 64 MiB VMEM; a KV-tiled (flash-style) inner loop would make
    # the footprint S-independent.

    inputs = [x]
    in_specs = [pl.BlockSpec((1, S, D), lambda b, q: (b, 0, 0))]
    if mask_rank == 2:
        inputs.append(mask_arr)
        in_specs.append(pl.BlockSpec((Tq, S), lambda b, q: (q, 0)))
    elif mask_rank == 3:
        inputs.append(mask_arr)
        in_specs.append(pl.BlockSpec((1, Tq, S), lambda b, q: (b, q, 0)))

    def _const_spec(shape):
        n = len(shape)
        return pl.BlockSpec(shape, lambda b, q, n=n: (0,) * n)

    inputs += [wqkv_t, bqkv, wd_t, bd]
    in_specs += [_const_spec((D, 3 * HD)), _const_spec((1, 3 * HD)),
                 _const_spec((HD, Dp)), _const_spec((1, Dp))]

    out_shapes = [jax.ShapeDtypeStruct((B, S, Dp), x.dtype)]
    out_specs = [pl.BlockSpec((1, Tq, Dp), lambda b, q: (b, q, 0))]
    if return_attention_weights:
        out_shapes.append(jax.ShapeDtypeStruct((B, H, S, S), attn_dtype))
        out_specs.append(pl.BlockSpec((1, H, Tq, S),
                                      lambda b, q: (b, 0, q, 0)))

    vmem_limit = int(min(budget, max(2 * footprint(Tq), 16 * 1024 * 1024)))

    kernel = functools.partial(
        _mha_kernel, H=H, D=D, Dp=Dp, HD=HD, Tq=Tq,
        compute_dtype=compute_dtype, mask_rank=mask_rank,
        return_attn=return_attention_weights)

    results = pl.pallas_call(
        kernel,
        out_shape=tuple(out_shapes),
        grid_spec=pltpu.PrefetchScalarGridSpec(
            num_scalar_prefetch=0,
            # batch is "parallel" (megacore); q tiles MUST stay the inner
            # sequential ("arbitrary") axis -- see _mha_kernel docstring.
            grid=(B, nq),
            in_specs=in_specs,
            out_specs=out_specs,
            scratch_shapes=[pltpu.VMEM((S, 3 * HD), compute_dtype)]),
        compiler_params=pltpu.CompilerParams(
            dimension_semantics=("parallel", "arbitrary"),
            vmem_limit_bytes=vmem_limit),
    )(*inputs)

    if return_attention_weights:
        out, attn = results
    else:
        (out,) = results
        attn = None
    if Dp != D:
        out = out[:, :, :D]
    return out, attn


def reference(x, params, *, D, H, mask=None):
    """Pure-JAX reference mirroring the PyTorch forward."""
    B, S, _ = x.shape
    q = x @ params['wq'].T + params['bq']
    k = x @ params['wk'].T + params['bk']
    v = x @ params['wv'].T + params['bv']

    def split(t):
        return t.reshape(B, S, H, D).transpose(0, 2, 1, 3)     # (B,H,S,D)

    q, k, v = split(q), split(k), split(v)
    scores = jnp.einsum('bhqd,bhkd->bhqk', q, k) / math.sqrt(D)
    if mask is not None:
        m = jnp.asarray(mask, jnp.float32)
        if m.ndim == 2:
            m = m[None, None]
        elif m.ndim == 3:
            m = m[:, None]
        scores = scores + m * (-1e9)
    w = jax.nn.softmax(scores, axis=-1)
    ctx = jnp.einsum('bhqk,bhkd->bhqd', w, v)
    ctx = ctx.transpose(0, 2, 1, 3).reshape(B, S, H * D)
    out = ctx @ params['wd'].T + params['bd']
    return out, w


if __name__ == "__main__":
    B, S, D, H = 2, 16, 32, 4          # small shapes; H*D = 128 (lane aligned)
    HD = D * H

    key = jax.random.PRNGKey(0)
    keys = jax.random.split(key, 9)
    params = {
        'wq': 0.02 * jax.random.normal(keys[0], (HD, D), jnp.float32),
        'bq': 0.02 * jax.random.normal(keys[1], (HD,), jnp.float32),
        'wk': 0.02 * jax.random.normal(keys[2], (HD, D), jnp.float32),
        'bk': 0.02 * jax.random.normal(keys[3], (HD,), jnp.float32),
        'wv': 0.02 * jax.random.normal(keys[4], (HD, D), jnp.float32),
        'bv': 0.02 * jax.random.normal(keys[5], (HD,), jnp.float32),
        'wd': 0.02 * jax.random.normal(keys[6], (D, HD), jnp.float32),
        'bd': 0.02 * jax.random.normal(keys[7], (D,), jnp.float32),
    }
    x = jax.random.normal(keys[8], (B, S, D), jnp.float32)

    ref_out, ref_attn = reference(x, params, D=D, H=H)
    mask2d = jnp.triu(jnp.ones((S, S), jnp.float32), k=1)
    ref_out_m, ref_attn_m = reference(x, params, D=D, H=H, mask=mask2d)

    TOL_BF = dict(rtol=5e-2, atol=5e-3)     # bf16 MXU operands
    TOL_F32 = dict(rtol=2e-3, atol=1e-4)    # fp32 path

    # 1) default path: bf16 operands / bf16 scratch, fp32 softmax, 2 q tiles,
    #    attention weights returned with exact normalization.
    out, attn = multihead_attention(x, params, D=D, H=H, q_block=8)
    out, attn = jax.block_until_ready((out, attn))
    np.testing.assert_allclose(np.asarray(out), np.asarray(ref_out), **TOL_BF)
    np.testing.assert_allclose(np.asarray(attn), np.asarray(ref_attn), **TOL_BF)
    row_sums = np.asarray(attn).sum(-1)
    np.testing.assert_allclose(row_sums, np.ones_like(row_sums),
                               rtol=1e-5, atol=1e-5)

    # 2) causal (S, S) additive mask (kept 2-D, not batch-broadcast in HBM).
    out_m, attn_m = multihead_attention(x, params, D=D, H=H, mask=mask2d,
                                        q_block=8)
    jax.block_until_ready((out_m, attn_m))
    np.testing.assert_allclose(np.asarray(out_m), np.asarray(ref_out_m), **TOL_BF)
    np.testing.assert_allclose(np.asarray(attn_m), np.asarray(ref_attn_m), **TOL_BF)

    # 3) batched (B, S, S) mask path.
    mask3d = jnp.broadcast_to(mask2d[None], (B, S, S))
    out_m3, attn_m3 = multihead_attention(x, params, D=D, H=H, mask=mask3d,
                                          q_block=8)
    jax.block_until_ready((out_m3, attn_m3))
    np.testing.assert_allclose(np.asarray(out_m3), np.asarray(ref_out_m), **TOL_BF)
    np.testing.assert_allclose(np.asarray(attn_m3), np.asarray(ref_attn_m), **TOL_BF)

    # 4) fp32 reference-precision path, auto-selected Tq.
    out32, attn32 = multihead_attention(x, params, D=D, H=H,
                                        compute_dtype=jnp.float32)
    jax.block_until_ready((out32, attn32))
    np.testing.assert_allclose(np.asarray(out32), np.asarray(ref_out), **TOL_F32)
    np.testing.assert_allclose(np.asarray(attn32), np.asarray(ref_attn), **TOL_F32)

    # 5) output-only fast path: skips the O(S^2) attention-weights writeback
    #    and uses deferred softmax normalization on the (Tq, D) context.
    out_only, none_attn = multihead_attention(
        x, params, D=D, H=H, q_block=8, return_attention_weights=False)
    out_only = jax.block_until_ready(out_only)
    assert none_attn is None
    np.testing.assert_allclose(np.asarray(out_only), np.asarray(ref_out), **TOL_BF)

    print("KERNEL_OK")
</pallas_src>

<mosaic_0001>
module attributes {stable_mosaic.version = 11 : i64} {
  func.func @_mha_kernel(%arg0: i32, %arg1: i32, %arg2: memref<1x16x32xf32, #tpu.memory_space<vmem>>, %arg3: memref<32x384xbf16, #tpu.memory_space<vmem>>, %arg4: memref<1x384xf32, #tpu.memory_space<vmem>>, %arg5: memref<128x128xbf16, #tpu.memory_space<vmem>>, %arg6: memref<1x128xf32, #tpu.memory_space<vmem>>, %arg7: memref<1x8x128xf32, #tpu.memory_space<vmem>>, %arg8: memref<1x4x8x16xf32, #tpu.memory_space<vmem>>, %arg9: memref<16x384xbf16, #tpu.memory_space<vmem>>) attributes {dimension_semantics = [#tpu.dimension_semantics<parallel>, #tpu.dimension_semantics<arbitrary>], iteration_bounds = array<i64: 2, 2>, scalar_prefetch = 0 : i64, scratch_operands = 1 : i64, tpu.core_type = #tpu.core_type<tc>, window_params = [{transform_indices = @transform_0, window_bounds = array<i64: 1, 16, 32>}, {pipeline_mode = #tpu.pipeline_mode<synchronous>, transform_indices = @transform_1, window_bounds = array<i64: 32, 384>}, {pipeline_mode = #tpu.pipeline_mode<synchronous>, transform_indices = @transform_2, window_bounds = array<i64: 1, 384>}, {pipeline_mode = #tpu.pipeline_mode<synchronous>, transform_indices = @transform_3, window_bounds = array<i64: 128, 128>}, {pipeline_mode = #tpu.pipeline_mode<synchronous>, transform_indices = @transform_4, window_bounds = array<i64: 1, 128>}, {transform_indices = @transform_5, window_bounds = array<i64: 1, 8, 128>}, {transform_indices = @transform_6, window_bounds = array<i64: 1, 4, 8, 16>}]} {
    %c0_i32 = arith.constant 0 : i32
    %0 = arith.cmpi eq, %arg1, %c0_i32 : i32
    %1 = arith.extui %0 : i1 to i32
    %c0_i32_0 = arith.constant 0 : i32
    %2 = arith.cmpi ne, %1, %c0_i32_0 : i32
    scf.if %2 {
      %c0_59 = arith.constant 0 : index
      %c0_60 = arith.constant 0 : index
      %c0_61 = arith.constant 0 : index
      %112 = vector.load %arg2[%c0_59, %c0_60, %c0_61] : memref<1x16x32xf32, #tpu.memory_space<vmem>>, vector<1x16x32xf32>
      %113 = vector.shape_cast %112 : vector<1x16x32xf32> to vector<16x32xf32>
      %114 = arith.truncf %113 : vector<16x32xf32> to vector<16x32xbf16>
      %c0_62 = arith.constant 0 : index
      %c0_63 = arith.constant 0 : index
      %115 = vector.load %arg3[%c0_62, %c0_63] : memref<32x384xbf16, #tpu.memory_space<vmem>>, vector<32x384xbf16>
      %cst_64 = arith.constant dense<0.000000e+00> : vector<16x384xf32>
      %116 = tpu.matmul %114, %115, %cst_64 {dimension_numbers = #tpu.dot_dimension_numbers<[1], [0], [0], [1], [0, 0, 1, 1], [], []>} : vector<16x32xbf16>, vector<32x384xbf16>, vector<16x384xf32> -> vector<16x384xf32>
      %c0_65 = arith.constant 0 : index
      %c0_66 = arith.constant 0 : index
      %117 = vector.load %arg4[%c0_65, %c0_66] : memref<1x384xf32, #tpu.memory_space<vmem>>, vector<1x384xf32>
      %118 = vector.broadcast %117 : vector<1x384xf32> to vector<16x384xf32>
      %119 = arith.addf %116, %118 : vector<16x384xf32>
      %120 = arith.truncf %119 : vector<16x384xf32> to vector<16x384xbf16>
      %c0_67 = arith.constant 0 : index
      %c0_68 = arith.constant 0 : index
      %121 = vector.load %arg9[%c0_67, %c0_68] : memref<16x384xbf16, #tpu.memory_space<vmem>>, vector<16x384xbf16>
      tpu.vector_store %arg9[%c0_67, %c0_68], %120 {strides = array<i32>} : memref<16x384xbf16, #tpu.memory_space<vmem>>, vector<16x384xbf16>,
    } else {
    }
    %c8_i32 = arith.constant 8 : i32
    %3 = arith.muli %arg1, %c8_i32 : i32
    %4 = tpu.assume_multiple %3, 8 : i32
    %cst = arith.constant 0.000000e+00 : f32
    %5 = vector.broadcast %cst : f32 to vector<8x128xf32>
    %6 = arith.index_cast %4 : i32 to index
    %c0 = arith.constant 0 : index
    %7 = vector.load %arg9[%6, %c0] : memref<16x384xbf16, #tpu.memory_space<vmem>>, vector<8x32xbf16>
    %c0_1 = arith.constant 0 : index
    %c128 = arith.constant 128 : index
    %8 = vector.load %arg9[%c0_1, %c128] : memref<16x384xbf16, #tpu.memory_space<vmem>>, vector<16x32xbf16>
    %c0_2 = arith.constant 0 : index
    %c256 = arith.constant 256 : index
    %9 = vector.load %arg9[%c0_2, %c256] : memref<16x384xbf16, #tpu.memory_space<vmem>>, vector<16x32xbf16>
    %cst_3 = arith.constant dense<0.000000e+00> : vector<8x16xf32>
    %10 = tpu.matmul %7, %8, %cst_3 {dimension_numbers = #tpu.dot_dimension_numbers<[1], [1], [0], [0], [0, 0, 1, 0], [], []>} : vector<8x32xbf16>, vector<16x32xbf16>, vector<8x16xf32> -> vector<8x16xf32>
    %cst_4 = arith.constant dense<0xFF800000> : vector<8xf32>
    %11 = vector.multi_reduction <maximumf>, %10, %cst_4 [1] : vector<8x16xf32> to vector<8xf32>
    %12 = vector.shape_cast %11 : vector<8xf32> to vector<8x1xf32>
    %13 = vector.broadcast %12 : vector<8x1xf32> to vector<8x16xf32>
    %14 = arith.subf %10, %13 : vector<8x16xf32>
    %15 = math.exp %14 : vector<8x16xf32>
    %cst_5 = arith.constant dense<0.000000e+00> : vector<8xf32>
    %16 = vector.multi_reduction <add>, %15, %cst_5 [1] : vector<8x16xf32> to vector<8xf32>
    %17 = vector.shape_cast %16 : vector<8xf32> to vector<8x1xf32>
    %cst_6 = arith.constant 1.000000e+00 : f32
    %18 = vector.broadcast %cst_6 : f32 to vector<8x1xf32>
    %19 = arith.divf %18, %17 : vector<8x1xf32>
    %20 = vector.broadcast %19 : vector<8x1xf32> to vector<8x16xf32>
    %21 = arith.mulf %15, %20 : vector<8x16xf32>
    %c0_7 = arith.constant 0 : index
    %c0_8 = arith.constant 0 : index
    %c0_9 = arith.constant 0 : index
    %c0_10 = arith.constant 0 : index
    %22 = vector.load %arg8[%c0_7, %c0_8, %c0_9, %c0_10] : memref<1x4x8x16xf32, #tpu.memory_space<vmem>>, vector<1x1x8x16xf32>
    %23 = vector.shape_cast %22 : vector<1x1x8x16xf32> to vector<8x16xf32>
    %24 = vector.shape_cast %21 : vector<8x16xf32> to vector<1x1x8x16xf32>
    tpu.vector_store %arg8[%c0_7, %c0_8, %c0_9, %c0_10], %24 {strides = array<i32>} : memref<1x4x8x16xf32, #tpu.memory_space<vmem>>, vector<1x1x8x16xf32>,
    %25 = arith.truncf %21 : vector<8x16xf32> to vector<8x16xbf16>
    %cst_11 = arith.constant dense<0.000000e+00> : vector<8x32xf32>
    %26 = tpu.matmul %25, %9, %cst_11 {dimension_numbers = #tpu.dot_dimension_numbers<[1], [0], [0], [1], [0, 0, 1, 1], [], []>} : vector<8x16xbf16>, vector<16x32xbf16>, vector<8x32xf32> -> vector<8x32xf32>
    %27 = arith.truncf %26 : vector<8x32xf32> to vector<8x32xbf16>
    %c0_12 = arith.constant 0 : index
    %c0_13 = arith.constant 0 : index
    %28 = vector.load %arg5[%c0_12, %c0_13] : memref<128x128xbf16, #tpu.memory_space<vmem>>, vector<32x128xbf16>
    %cst_14 = arith.constant dense<0.000000e+00> : vector<8x128xf32>
    %29 = tpu.matmul %27, %28, %cst_14 {dimension_numbers = #tpu.dot_dimension_numbers<[1], [0], [0], [1], [0, 0, 1, 1], [], []>} : vector<8x32xbf16>, vector<32x128xbf16>, vector<8x128xf32> -> vector<8x128xf32>
    %30 = arith.addf %5, %29 : vector<8x128xf32>
    %31 = arith.index_cast %4 : i32 to index
    %c32 = arith.constant 32 : index
    %32 = vector.load %arg9[%31, %c32] : memref<16x384xbf16, #tpu.memory_space<vmem>>, vector<8x32xbf16>
    %c0_15 = arith.constant 0 : index
    %c160 = arith.constant 160 : index
    %33 = vector.load %arg9[%c0_15, %c160] : memref<16x384xbf16, #tpu.memory_space<vmem>>, vector<16x32xbf16>
    %c0_16 = arith.constant 0 : index
    %c288 = arith.constant 288 : index
    %34 = vector.load %arg9[%c0_16, %c288] : memref<16x384xbf16, #tpu.memory_space<vmem>>, vector<16x32xbf16>
    %cst_17 = arith.constant dense<0.000000e+00> : vector<8x16xf32>
    %35 = tpu.matmul %32, %33, %cst_17 {dimension_numbers = #tpu.dot_dimension_numbers<[1], [1], [0], [0], [0, 0, 1, 0], [], []>} : vector<8x32xbf16>, vector<16x32xbf16>, vector<8x16xf32> -> vector<8x16xf32>
    %cst_18 = arith.constant dense<0xFF800000> : vector<8xf32>
    %36 = vector.multi_reduction <maximumf>, %35, %cst_18 [1] : vector<8x16xf32> to vector<8xf32>
    %37 = vector.shape_cast %36 : vector<8xf32> to vector<8x1xf32>
    %38 = vector.broadcast %37 : vector<8x1xf32> to vector<8x16xf32>
    %39 = arith.subf %35, %38 : vector<8x16xf32>
    %40 = math.exp %39 : vector<8x16xf32>
    %cst_19 = arith.constant dense<0.000000e+00> : vector<8xf32>
    %41 = vector.multi_reduction <add>, %40, %cst_19 [1] : vector<8x16xf32> to vector<8xf32>
    %42 = vector.shape_cast %41 : vector<8xf32> to vector<8x1xf32>
    %cst_20 = arith.constant 1.000000e+00 : f32
    %43 = vector.broadcast %cst_20 : f32 to vector<8x1xf32>
    %44 = arith.divf %43, %42 : vector<8x1xf32>
    %45 = vector.broadcast %44 : vector<8x1xf32> to vector<8x16xf32>
    %46 = arith.mulf %40, %45 : vector<8x16xf32>
    %c0_21 = arith.constant 0 : index
    %c1 = arith.constant 1 : index
    %c0_22 = arith.constant 0 : index
    %c0_23 = arith.constant 0 : index
    %47 = vector.load %arg8[%c0_21, %c1, %c0_22, %c0_23] : memref<1x4x8x16xf32, #tpu.memory_space<vmem>>, vector<1x1x8x16xf32>
    %48 = vector.shape_cast %47 : vector<1x1x8x16xf32> to vector<8x16xf32>
    %49 = vector.shape_cast %46 : vector<8x16xf32> to vector<1x1x8x16xf32>
    tpu.vector_store %arg8[%c0_21, %c1, %c0_22, %c0_23], %49 {strides = array<i32>} : memref<1x4x8x16xf32, #tpu.memory_space<vmem>>, vector<1x1x8x16xf32>,
    %50 = arith.truncf %46 : vector<8x16xf32> to vector<8x16xbf16>
    %cst_24 = arith.constant dense<0.000000e+00> : vector<8x32xf32>
    %51 = tpu.matmul %50, %34, %cst_24 {dimension_numbers = #tpu.dot_dimension_numbers<[1], [0], [0], [1], [0, 0, 1, 1], [], []>} : vector<8x16xbf16>, vector<16x32xbf16>, vector<8x32xf32> -> vector<8x32xf32>
    %52 = arith.truncf %51 : vector<8x32xf32> to vector<8x32xbf16>
    %c32_25 = arith.constant 32 : index
    %c0_26 = arith.constant 0 : index
    %53 = vector.load %arg5[%c32_25, %c0_26] : memref<128x128xbf16, #tpu.memory_space<vmem>>, vector<32x128xbf16>
    %cst_27 = arith.constant dense<0.000000e+00> : vector<8x128xf32>
    %54 = tpu.matmul %52, %53, %cst_27 {dimension_numbers = #tpu.dot_dimension_numbers<[1], [0], [0], [1], [0, 0, 1, 1], [], []>} : vector<8x32xbf16>, vector<32x128xbf16>, vector<8x128xf32> -> vector<8x128xf32>
    %55 = arith.addf %30, %54 : vector<8x128xf32>
    %56 = arith.index_cast %4 : i32 to index
    %c64 = arith.constant 64 : index
    %57 = vector.load %arg9[%56, %c64] : memref<16x384xbf16, #tpu.memory_space<vmem>>, vector<8x32xbf16>
    %c0_28 = arith.constant 0 : index
    %c192 = arith.constant 192 : index
    %58 = vector.load %arg9[%c0_28, %c192] : memref<16x384xbf16, #tpu.memory_space<vmem>>, vector<16x32xbf16>
    %c0_29 = arith.constant 0 : index
    %c320 = arith.constant 320 : index
    %59 = vector.load %arg9[%c0_29, %c320] : memref<16x384xbf16, #tpu.memory_space<vmem>>, vector<16x32xbf16>
    %cst_30 = arith.constant dense<0.000000e+00> : vector<8x16xf32>
    %60 = tpu.matmul %57, %58, %cst_30 {dimension_numbers = #tpu.dot_dimension_numbers<[1], [1], [0], [0], [0, 0, 1, 0], [], []>} : vector<8x32xbf16>, vector<16x32xbf16>, vector<8x16xf32> -> vector<8x16xf32>
    %cst_31 = arith.constant dense<0xFF800000> : vector<8xf32>
    %61 = vector.multi_reduction <maximumf>, %60, %cst_31 [1] : vector<8x16xf32> to vector<8xf32>
    %62 = vector.shape_cast %61 : vector<8xf32> to vector<8x1xf32>
    %63 = vector.broadcast %62 : vector<8x1xf32> to vector<8x16xf32>
    %64 = arith.subf %60, %63 : vector<8x16xf32>
    %65 = math.exp %64 : vector<8x16xf32>
    %cst_32 = arith.constant dense<0.000000e+00> : vector<8xf32>
    %66 = vector.multi_reduction <add>, %65, %cst_32 [1] : vector<8x16xf32> to vector<8xf32>
    %67 = vector.shape_cast %66 : vector<8xf32> to vector<8x1xf32>
    %cst_33 = arith.constant 1.000000e+00 : f32
    %68 = vector.broadcast %cst_33 : f32 to vector<8x1xf32>
    %69 = arith.divf %68, %67 : vector<8x1xf32>
    %70 = vector.broadcast %69 : vector<8x1xf32> to vector<8x16xf32>
    %71 = arith.mulf %65, %70 : vector<8x16xf32>
    %c0_34 = arith.constant 0 : index
    %c2 = arith.constant 2 : index
    %c0_35 = arith.constant 0 : index
    %c0_36 = arith.constant 0 : index
    %72 = vector.load %arg8[%c0_34, %c2, %c0_35, %c0_36] : memref<1x4x8x16xf32, #tpu.memory_space<vmem>>, vector<1x1x8x16xf32>
    %73 = vector.shape_cast %72 : vector<1x1x8x16xf32> to vector<8x16xf32>
    %74 = vector.shape_cast %71 : vector<8x16xf32> to vector<1x1x8x16xf32>
    tpu.vector_store %arg8[%c0_34, %c2, %c0_35, %c0_36], %74 {strides = array<i32>} : memref<1x4x8x16xf32, #tpu.memory_space<vmem>>, vector<1x1x8x16xf32>,
    %75 = arith.truncf %71 : vector<8x16xf32> to vector<8x16xbf16>
    %cst_37 = arith.constant dense<0.000000e+00> : vector<8x32xf32>
    %76 = tpu.matmul %75, %59, %cst_37 {dimension_numbers = #tpu.dot_dimension_numbers<[1], [0], [0], [1], [0, 0, 1, 1], [], []>} : vector<8x16xbf16>, vector<16x32xbf16>, vector<8x32xf32> -> vector<8x32xf32>
    %77 = arith.truncf %76 : vector<8x32xf32> to vector<8x32xbf16>
    %c64_38 = arith.constant 64 : index
    %c0_39 = arith.constant 0 : index
    %78 = vector.load %arg5[%c64_38, %c0_39] : memref<128x128xbf16, #tpu.memory_space<vmem>>, vector<32x128xbf16>
    %cst_40 = arith.constant dense<0.000000e+00> : vector<8x128xf32>
    %79 = tpu.matmul %77, %78, %cst_40 {dimension_numbers = #tpu.dot_dimension_numbers<[1], [0], [0], [1], [0, 0, 1, 1], [], []>} : vector<8x32xbf16>, vector<32x128xbf16>, vector<8x128xf32> -> vector<8x128xf32>
    %80 = arith.addf %55, %79 : vector<8x128xf32>
    %81 = arith.index_cast %4 : i32 to index
    %c96 = arith.constant 96 : index
    %82 = vector.load %arg9[%81, %c96] : memref<16x384xbf16, #tpu.memory_space<vmem>>, vector<8x32xbf16>
    %c0_41 = arith.constant 0 : index
    %c224 = arith.constant 224 : index
    %83 = vector.load %arg9[%c0_41, %c224] : memref<16x384xbf16, #tpu.memory_space<vmem>>, vector<16x32xbf16>
    %c0_42 = arith.constant 0 : index
    %c352 = arith.constant 352 : index
    %84 = vector.load %arg9[%c0_42, %c352] : memref<16x384xbf16, #tpu.memory_space<vmem>>, vector<16x32xbf16>
    %cst_43 = arith.constant dense<0.000000e+00> : vector<8x16xf32>
    %85 = tpu.matmul %82, %83, %cst_43 {dimension_numbers = #tpu.dot_dimension_numbers<[1], [1], [0], [0], [0, 0, 1, 0], [], []>} : vector<8x32xbf16>, vector<16x32xbf16>, vector<8x16xf32> -> vector<8x16xf32>
    %cst_44 = arith.constant dense<0xFF800000> : vector<8xf32>
    %86 = vector.multi_reduction <maximumf>, %85, %cst_44 [1] : vector<8x16xf32> to vector<8xf32>
    %87 = vector.shape_cast %86 : vector<8xf32> to vector<8x1xf32>
    %88 = vector.broadcast %87 : vector<8x1xf32> to vector<8x16xf32>
    %89 = arith.subf %85, %88 : vector<8x16xf32>
    %90 = math.exp %89 : vector<8x16xf32>
    %cst_45 = arith.constant dense<0.000000e+00> : vector<8xf32>
    %91 = vector.multi_reduction <add>, %90, %cst_45 [1] : vector<8x16xf32> to vector<8xf32>
    %92 = vector.shape_cast %91 : vector<8xf32> to vector<8x1xf32>
    %cst_46 = arith.constant 1.000000e+00 : f32
    %93 = vector.broadcast %cst_46 : f32 to vector<8x1xf32>
    %94 = arith.divf %93, %92 : vector<8x1xf32>
    %95 = vector.broadcast %94 : vector<8x1xf32> to vector<8x16xf32>
    %96 = arith.mulf %90, %95 : vector<8x16xf32>
    %c0_47 = arith.constant 0 : index
    %c3 = arith.constant 3 : index
    %c0_48 = arith.constant 0 : index
    %c0_49 = arith.constant 0 : index
    %97 = vector.load %arg8[%c0_47, %c3, %c0_48, %c0_49] : memref<1x4x8x16xf32, #tpu.memory_space<vmem>>, vector<1x1x8x16xf32>
    %98 = vector.shape_cast %97 : vector<1x1x8x16xf32> to vector<8x16xf32>
    %99 = vector.shape_cast %96 : vector<8x16xf32> to vector<1x1x8x16xf32>
    tpu.vector_store %arg8[%c0_47, %c3, %c0_48, %c0_49], %99 {strides = array<i32>} : memref<1x4x8x16xf32, #tpu.memory_space<vmem>>, vector<1x1x8x16xf32>,
    %100 = arith.truncf %96 : vector<8x16xf32> to vector<8x16xbf16>
    %cst_50 = arith.constant dense<0.000000e+00> : vector<8x32xf32>
    %101 = tpu.matmul %100, %84, %cst_50 {dimension_numbers = #tpu.dot_dimension_numbers<[1], [0], [0], [1], [0, 0, 1, 1], [], []>} : vector<8x16xbf16>, vector<16x32xbf16>, vector<8x32xf32> -> vector<8x32xf32>
    %102 = arith.truncf %101 : vector<8x32xf32> to vector<8x32xbf16>
    %c96_51 = arith.constant 96 : index
    %c0_52 = arith.constant 0 : index
    %103 = vector.load %arg5[%c96_51, %c0_52] : memref<128x128xbf16, #tpu.memory_space<vmem>>, vector<32x128xbf16>
    %cst_53 = arith.constant dense<0.000000e+00> : vector<8x128xf32>
    %104 = tpu.matmul %102, %103, %cst_53 {dimension_numbers = #tpu.dot_dimension_numbers<[1], [0], [0], [1], [0, 0, 1, 1], [], []>} : vector<8x32xbf16>, vector<32x128xbf16>, vector<8x128xf32> -> vector<8x128xf32>
    %105 = arith.addf %80, %104 : vector<8x128xf32>
    %c0_54 = arith.constant 0 : index
    %c0_55 = arith.constant 0 : index
    %106 = vector.load %arg6[%c0_54, %c0_55] : memref<1x128xf32, #tpu.memory_space<vmem>>, vector<1x128xf32>
    %107 = vector.broadcast %106 : vector<1x128xf32> to vector<8x128xf32>
    %108 = arith.addf %105, %107 : vector<8x128xf32>
    %c0_56 = arith.constant 0 : index
    %c0_57 = arith.constant 0 : index
    %c0_58 = arith.constant 0 : index
    %109 = vector.load %arg7[%c0_56, %c0_57, %c0_58] : memref<1x8x128xf32, #tpu.memory_space<vmem>>, vector<1x8x128xf32>
    %110 = vector.shape_cast %109 : vector<1x8x128xf32> to vector<8x128xf32>
    %111 = vector.shape_cast %108 : vector<8x128xf32> to vector<1x8x128xf32>
    tpu.vector_store %arg7[%c0_56, %c0_57, %c0_58], %111 {strides = array<i32>} : memref<1x8x128xf32, #tpu.memory_space<vmem>>, vector<1x8x128xf32>,
    return
  }
  func.func @transform_0(%arg0: i32, %arg1: i32) -> (i32, i32, i32) {
    %c0_i32 = arith.constant 0 : i32
    %c0_i32_0 = arith.constant 0 : i32
    %c0_i32_1 = arith.constant 0 : i32
    return %arg0, %c0_i32, %c0_i32_0 : i32, i32, i32
  }
  func.func @transform_1(%arg0: i32, %arg1: i32) -> (i32, i32) {
    %c0_i32 = arith.constant 0 : i32
    %c0_i32_0 = arith.constant 0 : i32
    %c0_i32_1 = arith.constant 0 : i32
    return %c0_i32, %c0_i32_0 : i32, i32
  }
  func.func @transform_2(%arg0: i32, %arg1: i32) -> (i32, i32) {
    %c0_i32 = arith.constant 0 : i32
    %c0_i32_0 = arith.constant 0 : i32
    %c0_i32_1 = arith.constant 0 : i32
    return %c0_i32, %c0_i32_0 : i32, i32
  }
  func.func @transform_3(%arg0: i32, %arg1: i32) -> (i32, i32) {
    %c0_i32 = arith.constant 0 : i32
    %c0_i32_0 = arith.constant 0 : i32
    %c0_i32_1 = arith.constant 0 : i32
    return %c0_i32, %c0_i32_0 : i32, i32
  }
  func.func @transform_4(%arg0: i32, %arg1: i32) -> (i32, i32) {
    %c0_i32 = arith.constant 0 : i32
    %c0_i32_0 = arith.constant 0 : i32
    %c0_i32_1 = arith.constant 0 : i32
    return %c0_i32, %c0_i32_0 : i32, i32
  }
  func.func @transform_5(%arg0: i32, %arg1: i32) -> (i32, i32, i32) {
    %c0_i32 = arith.constant 0 : i32
    %c0_i32_0 = arith.constant 0 : i32
    return %arg0, %arg1, %c0_i32 : i32, i32, i32
  }
  func.func @transform_6(%arg0: i32, %arg1: i32) -> (i32, i32, i32, i32) {
    %c0_i32 = arith.constant 0 : i32
    %c0_i32_0 = arith.constant 0 : i32
    %c0_i32_1 = arith.constant 0 : i32
    return %arg0, %c0_i32, %arg1, %c0_i32_0 : i32, i32, i32, i32
  }
}

</mosaic_0001>

<bundles_post_ra>
// kernel: tpu_custom_call.1
= control target key start
LH: loop header
LB: loop body
LE: loop exit
PB: predicated region body
PF: predicated region fallthrough
CT: control target
= control target key end

     0   :  { %s2100_s0 = inlined_call_operand.hbm [shape: f32[2,16,32], index: 0, kind: input, shape index: {}]   ;;  %s2101_s1 = inlined_call_operand.hbm [shape: bf16[32,384], index: 1, kind: input, shape index: {}]   ;;  %s2102_s2 = inlined_call_operand.hbm [shape: f32[1,384], index: 2, kind: input, shape index: {}]   ;;  %s2103_s3 = inlined_call_operand.hbm [shape: bf16[128,128], index: 3, kind: input, shape index: {}]   ;;  %s2104_s4 = inlined_call_operand.vmem [shape: f32[1,128], index: 4, kind: input, shape index: {}]   ;;  %s2105_s5 = inlined_call_operand.hbm [shape: f32[2,16,128], index: 5, kind: output, shape index: {0}]   ;;  %s2106_s6 = inlined_call_operand.hbm [shape: f32[2,4,16,16], index: 6, kind: output, shape index: {1}]  }
   0x1   :  { %2114 = sst [smem:[#allocation24_spill]] %s2101_s1 }
   0x2   :  { %2115 = sst [smem:[#allocation25_spill]] %s2102_s2 }
   0x3   :  { %2116 = sst [smem:[#allocation26_spill]] %s2103_s3 }
   0x4   :  { %2117 = sst [smem:[#allocation27_spill]] %s2104_s4 }
   0x5   :  { %2118 = sst [smem:[#allocation28_spill]] %s2105_s5 }
   0x6   :  { %2119 = sst [smem:[#allocation29_spill]] %s2106_s6 }
   0x7   :  { %12 = vsyncpa [#allocation4], 0 }
   0x8   :  { %14 = vsyncpa [#allocation4 + $0x1], 0 }
   0x9   :  { %15 = vsyncpa [#allocation7], 0 }
   0xa   :  { %16 = vsyncpa [#allocation10], 0 }
   0xb   :  { %17 = vsyncpa [#allocation5], 0 }
   0xc   :  { %19 = vsyncpa [#allocation5 + $0x1], 0 }
   0xd   :  { %20 = vsyncpa [#allocation13], 0 }
   0xe   :  { %22 = vsyncpa [#allocation13 + $0x1], 0  ;;  %s1796_s21 = smov 0   ;;  %s1798_s22 = smov 0  }
   0xf   :  { %s1800_s23 = smov 0   ;;  %s1802_s24 = smov 0  }
  0x10   :  { %s1804_s25 = smov 0   ;;  %s1806_s26 = smov 0  }
  0x11   :  { %s1808_s27 = smov 0   ;;  %s1810_s28 = smov 0  }
  0x12   :  { %s1812_s29 = smov 0   ;;  %s1814_s30 = smov 0  }
  0x13   :  { %s1816_s7 = smov 0  }
  0x14 LB: > { %2120 = sst [smem:[#allocation19_spill]] %s1704_s21  ;;  %s1137_s8 = sadd.s32 4294967295, %s1744_s7   ;;  %s1744_s7 = sphi %s1816_s7, %s28_s7   ;;  %s1740_s30 = sphi %s1814_s30, %s2150_s30   ;;  %s1736_s29 = sphi %s1812_s29, %s2141_s29   ;;  %s1732_s28 = sphi %s1810_s28, %s2149_s28   ;;  %s1728_s27 = sphi %s1808_s27, %s2140_s27   ;;  %s1724_s26 = sphi %s1806_s26, %s2148_s26   ;;  %s1720_s25 = sphi %s1804_s25, %s2147_s25   ;;  %s1716_s24 = sphi %s1802_s24, %s2146_s24   ;;  %s1712_s23 = sphi %s1800_s23, %s2145_s23   ;;  %s1708_s22 = sphi %s1798_s22, %s2144_s22   ;;  %s1704_s21 = sphi %s1796_s21, %s2143_s21  }
  0x15   : > { %2121 = sst [smem:[#allocation20_spill]] %s1736_s29  ;;  %s1138_s9 = sadd.s32 4294967294, %s1744_s7  }
  0x16   : > { %p60_p0 = scmp.ne.s32.totalorder %s1720_s25, %s1716_s24  ;;  %p1852_p1 = scmp.eq.s32.totalorder %s1137_s8, 0 }
  0x17   : > { %p169_p2 = scmp.ne.s32.totalorder %s1712_s23, %s1708_s22  ;;  %p170_p3 = scmp.eq.s32.totalorder %s1137_s8, 3 }
  0x18   : > { %p1860_p4 = por %p1852_p1, %p60_p0  ;;  %p175_p5 = scmp.ne.s32.totalorder %s1708_s22, %s1704_s21 }
  0x19   : > { %p1866_p6 = por %p170_p3, %p169_p2  ;;  %p176_p7 = scmp.eq.s32.totalorder %s1138_s9, 3 }
  0x1a   : > { %p1139_p8 = scmp.ge.s32.totalorder %s1744_s7, 1  ;;  %p211_p9 = scmp.lt.s32.totalorder %s1744_s7, 5 }
  0x1b   : > { %p1872_p10 = por %p176_p7, %p175_p5  ;;  %s2128_s1 = sld [smem:[#allocation24_spill]] }
  0x1c   : > { %p1876_p11 = pnand %p1139_p8, %p211_p9  ;;  %s1746_s18 = smov [#allocation6]  }
  0x1d   : > { %s2125_s13 = scalar_select %p1872_p10, 1, 0 }
  0x1e   : > { %p1313_p12 = pneg %p1876_p11  ;;  %s224_s19 = sshll.u32 %s1746_s18, 4  ;;  %s225_s19 = int_to_ptr.vmem [resolvable:$true] %s224_s19 }
  0x1f   : > { %2126 = sst [smem:[#allocation21_spill]] %s2125_s13  ;;  %s1747_s15 = smov 192  }
  0x20   : > { %p1887_p13 = pnand %p1313_p12, %p1852_p1  ;;  %s2130_s2 = sld [smem:[#allocation25_spill]] }
  0x21   : > { %s222_s17 = sshll.u32 %s2128_s1, 4  ;;  %s1748_s16 = smov 12   ;;  %s223_s17 = int_to_ptr.hbm [resolvable:$true] %s222_s17 }
  0x22   : > { %1316 = dma.hbm_to_vmem [thread:$0]  (!%p1887_p13), %s223_s17, 768, %s225_s19, [#allocation7], %s1747_s15, %s1747_s15, %s1748_s16  }
  0x23   : > { %s2131_s3 = sld [smem:[#allocation26_spill]]  ;;  %s1749_s21 = smov [#allocation8]  }
  0x24   : > { %s239_s24 = sshll.u32 %s1749_s21, 4  ;;  %s1750_s8 = smov [#allocation9]   ;;  %s240_s24 = int_to_ptr.vmem [resolvable:$true] %s239_s24 }
  0x25   : > { %s1751_s17 = smov 64   ;;  %s1752_s1 = smov 4  }
  0x26   : > { %s237_s9 = sshll.u32 %s2130_s2, 4  ;;  %s250_s2 = sshll.u32 %s1750_s8, 4  ;;  %s238_s9 = int_to_ptr.hbm [resolvable:$true] %s237_s9  ;;  %s251_s2 = int_to_ptr.vmem [resolvable:$true] %s250_s2 }
  0x27   : > { %1319 = dma.hbm_to_vmem [thread:$0]  (!%p1887_p13), %s238_s9, 48, %s240_s24, [#allocation7]  }
  0x28   : > { %s37_s19 = sadd.s32 1, %s1736_s29  ;;  %s40_s15 = sadd.s32 1, %s1740_s30 }
  0x29   : > { %s248_s13 = sshll.u32 %s2131_s3, 4  ;;  %p38_p0 = scmp.ge.s32.totalorder %s37_s19, 2  ;;  %s249_s13 = int_to_ptr.hbm [resolvable:$true] %s248_s13 }
  0x2a   : > { %1322 = dma.hbm_to_vmem [thread:$0]  (!%p1887_p13), %s249_s13, 1024, %s251_s2, [#allocation10], %s1751_s17, %s1751_s17, %s1752_s1  }
  0x2b   : > { %s47_s21 = sadd.s32 1, %s1724_s26  ;;  %p54_p2 = scmp.ne.s32.totalorder %s1724_s26, %s1720_s25 }
  0x2c   : > { %p55_p3 = scmp.eq.s32.totalorder %s1744_s7, 0  ;;  %s2152_s19 = smov (%p38_p0, %s37_s19), 0 }
  0x2d   : > { %2132 = sst [smem:[#allocation22_spill]] %s2152_s19  ;;  %s2154_s15 = smov (!%p38_p0, %s40_s15), %s1740_s30 }
  0x2e   : > { %p1912_p5 = por %p55_p3, %p54_p2  ;;  %s155_s20 = ssub.s32 %s1736_s29, %s2152_s19 }
  0x2f   : > { %p42_p7 = scmp.ge.s32.totalorder %s2154_s15, 2  ;;  %s159_s2 = sadd.s32 1, %s1712_s23 }
  0x30   : > { %p1337_p8 = scmp.lt.s32.totalorder %s1744_s7, 4  ;;  %s267_s13 = sand.u32 1, %s1724_s26  }
  0x31   : > { %s2156_s15 = smov (%p42_p7, %s2154_s15), 0  ;;  %s1144_s16 = sshll.u32 %s267_s13, 4 }
  0x32   : > { %2134 = sst [smem:[#allocation23_spill]] %s2156_s15  ;;  %s44_s18 = ssub.s32 %s1740_s30, %s2156_s15 }
  0x33   : > { %p45_p9 = scmp.eq.s32.totalorder %s44_s18, 0  ;;  %s156_s24 = sor.u32 %s155_s20, %s44_s18 }
  0x34   : > { %p157_p12 = scmp.eq.s32.totalorder %s156_s24, 0  ;;  %s1271_s8 = sshll.u32 %s1740_s30, 4 }
  0x35   : > { %s1927_s17 = scalar_select %p45_p9, %s1724_s26, %s47_s21  }
  0x36   : > { %s1930_s1 = scalar_select %p157_p12, %s1712_s23, %s159_s2  }
  0x37   : > { %s276_s29 = scalar_lea.hbm %s2100_s0, %s1271_s8  ;;  %s271_s4 = scalar_lea.vmem [#allocation3], %s1144_s16 }
  0x38   : > { %s279_s5 = sshll.u32 %s271_s4, 4  ;;  %s277_s6 = sshll.u32 %s276_s29, 4  ;;  %s280_s5 = int_to_ptr.vmem [resolvable:$true] %s279_s5  ;;  %s278_s6 = int_to_ptr.hbm [resolvable:$true] %s277_s6 }
  0x39   : > { %p1324_p13 = pnand %p1337_p8, %p1912_p5  ;;  %s268_s15 = scalar_lea.sflag [#allocation4], %s267_s13 }
  0x3a   : > { %s1753_s20 = smov 128   ;;  %s1754_s18 = smov 8  }
  0x3b   : > { %1326 = dma.hbm_to_vmem [thread:$0]  (!%p1324_p13), %s278_s6, 256, %s280_s5, %s268_s15, %s1753_s20, %s1753_s20, %s1754_s18  }
  0x3c   : > { %291 = sbr.rel (%p1876_p11) target bundleno = 1456 (0x5b0), region = 40  ;;  %s293_s21 = sand.u32 (!%p1876_p11), 1, %s1720_s25  }
  0x3d   : > { %s1942_s3 = sshll.u32 (!%p1876_p11), %s293_s21, 4  ;;  %s294_s4 = scalar_lea.sflag (!%p1876_p11), [#allocation4], %s293_s21 }
  0x3e   : > { %s297_s29 = scalar_lea.vmem (!%p1876_p11), [#allocation3], %s1942_s3 }
  0x41   : > { %1683 = dma.done.wait (%p1860_p4), %s294_s4, 256  }
  0x42   : > { %1685 = vsyncadd (%p1860_p4), %s294_s4, 4294967040 }
  0x43   : > { %1687 = dma.done.wait (%p1852_p1), [#allocation7], 816  }
  0x44   : > { %1689 = vsyncadd (%p1852_p1), [#allocation7], 4294966480 }
  0x45   : > { %1691 = dma.done.wait (%p1852_p1), [#allocation10], 1024  }
  0x46   : > { %1693 = vsyncadd (%p1852_p1), [#allocation10], 4294966272  ;;  %s1958_s5 = sand.u32 1, %s1708_s22   ;;  %p1154_p4 = scmp.ne.s32.totalorder %s1728_s27, 0 }
  0x47   : > { %s1152_s6 = sshll.u32 %s1958_s5, 3  ;;  %s1153_s11 = sshll.u32 %s1958_s5, 5 }
  0x48   : > { %s1962_s14 = scalar_lea.vmem [#allocation11], %s1152_s6  ;;  %s1964_s19 = scalar_lea.vmem [#allocation12], %s1153_s11 }
  0x49   : > { %351 = sbr.rel (%p1154_p4) target bundleno = 234 (0xea), region = 60 }
  0x4e   : > { %v1169_v0 = vld [vmem:[#allocation6 + $0x18] sm:$0xf]  ;;  %v1276_v1 = vld [vmem:[#allocation6 + $0x20] sm:$0xf0]  ;;  %v1275_v2 = vld [vmem:[#allocation6 + $0x1c] sm:$0xf] }
  0x4f   : > { %v1170_v3 = vor.u32 %v1276_v1, %v1169_v0  ;;  %v1171_v4 = vld [vmem:[#allocation6 + $0x24] sm:$0xf0]  ;;  %v1177_v5 = vld [vmem:[#allocation6 + $0x20] sm:$0xf]  ;;  %v1277_v6 = vld [vmem:[#allocation6 + $0x28] sm:$0xf0] }
  0x50   : > { %v1174_v7 = vor.u32 %v1275_v2, %v1171_v4  ;;  %v1178_v8 = vor.u32 %v1277_v6, %v1177_v5  ;;  %v1157_v9 = vld [vmem:[#allocation6] sm:$0xf]  ;;  %v1273_v10 = vld [vmem:[#allocation6 + $0x8] sm:$0xf0]  ;;  %v1272_v11 = vld [vmem:[#allocation6 + $0x4] sm:$0xf] }
  0x51   : > { %413 = vmatpush.bf16.msra.mxu0 %v1170_v3  ;;  %v1158_v12 = vor.u32 %v1273_v10, %v1157_v9  ;;  %v1159_v13 = vld [vmem:[#allocation6 + $0xc] sm:$0xf0]  ;;  %v1165_v14 = vld [vmem:[#allocation6 + $0x8] sm:$0xf]  ;;  %v1274_v15 = vld [vmem:[#allocation6 + $0x10] sm:$0xf0] }
  0x52   : > { %427 = vmatpush.bf16.msra.mxu1 %v1174_v7  ;;  %441 = vmatpush.bf16.msra.mxu2 %v1178_v8  ;;  %v1162_v16 = vor.u32 %v1272_v11, %v1159_v13  ;;  %v1166_v17 = vor.u32 %v1274_v15, %v1165_v14  ;;  %v352_v18 = vld [vmem:[%s297_s29] sm:$0xff]  ;;  %v353_v19 = vld [vmem:[%s297_s29 + $0x8] sm:$0xff]  ;;  %vm403_vm0 = vcmask 261120  }
  0x53   : > { %v354_v20 = vpack.c.bf16 %v353_v19, %v352_v18  ;;  %v363_v21 = vld [vmem:[#allocation8] sm:$0x7] }
  0x54   : > { %v365_v22 = vperm.slane %v363_v21, 0  ;;  %v366_v23 = vperm.slane %v363_v21, 1  ;;  %v367_v29 = vperm.slane %v363_v21, 2 }
  0x55   : > { %414 = vmatpush.bf16.msra.mxu0 %v1158_v12 }
  0x56   : > { %428 = vmatpush.bf16.msra.mxu1 %v1162_v16  ;;  %442 = vmatpush.bf16.msra.mxu2 %v1166_v17 }
  0x58   : > { %1179 = vmatmul.msk.bf16.vlgmr.msra.gmra.mxu0 %vm403_vm0, %v354_v20 }
  0x59   : > { %1180 = vmatmul.msk.bf16.vlgmr.msra.gmra.mxu1 %vm403_vm0, %v354_v20  ;;  %1181 = vmatmul.msk.bf16.vlgmr.msra.gmra.mxu2 %vm403_vm0, %v354_v20 }
  0xd5   : > { %v416_v24 = vpop.f32.mrf.mxu0 }
  0xd6   : > { %v417_v25 = vadd.f32 %v416_v24, %v365_v22  ;;  %v430_v26 = vpop.f32.mrf.mxu1 }
  0xd7   : > { %v431_v27 = vadd.f32 %v430_v26, %v366_v23 }
  0xd9   : > { %v449_v28 = vpack.c.bf16 %v431_v27, %v417_v25 }
  0xdb   : > { %453 = vst [vmem:[#allocation2] sm:$0xff] %v449_v28 }
  0xdc   : > { %v444_v30 = vpop.f32.mrf.mxu2 }
  0xdd   : > { %v445_v31 = vadd.f32 %v444_v30, %v367_v29  ;;  %v418_v32 = vpop.f32.mrf.mxu0 }
  0xde   : > { %v419_v33 = vadd.f32 %v418_v32, %v365_v22  ;;  %v432_v34 = vpop.f32.mrf.mxu1 }
  0xdf   : > { %v450_v35 = vpack.c.bf16 %v445_v31, %v445_v31  ;;  %v433_v36 = vadd.f32 %v432_v34, %v366_v23 }
  0xe1   : > { %454 = vst [vmem:[#allocation2 + $0x8] sm:$0xf] %v450_v35  ;;  %v451_v37 = vpack.c.bf16 %v433_v36, %v419_v33 }
  0xe3   : > { %455 = vst [vmem:[#allocation2 + $0xc] sm:$0xff] %v451_v37 }
  0xe4   : > { %v446_v38 = vpop.f32.mrf.mxu2 }
  0xe5   : > { %v447_v39 = vadd.f32 %v446_v38, %v367_v29 }
  0xe7   : > { %v452_v40 = vpack.c.bf16 %v447_v39, %v447_v39 }
  0xe9   : > { %456 = vst [vmem:[#allocation2 + $0x14] sm:$0xf] %v452_v40 }
  0xea PF: > { %v1196_v41 = vld [vmem:[#allocation2 + $0x4] sm:$0xf]  ;;  %v1283_v42 = vld [vmem:[#allocation2 + $0xc] sm:$0xf0]  ;;  %vm473_vm1 = vcmask 261120   ;;  %s1182_s10 = sshll.u32 %s1728_s27, 3 }
  0xeb   : > { %v1197_v43 = vor.u32 %v1283_v42, %v1196_v41  ;;  %v1186_v44 = vld [vmem:[#allocation2 + $0x4] sm:$0xf]  ;;  %v1279_v45 = vld [vmem:[#allocation2 + $0xc] sm:$0xf0]  ;;  %s458_s15 = sshra.s32 %s1182_s10, 3  ;;  %s1755_s9 = smov 96  }
  0xec   : > { %v1187_v46 = vor.u32 %v1279_v45, %v1186_v44  ;;  %s1278_s2 = smul.u32 12, %s458_s15  ;;  %vm493_vm2 = vcmask 130048   ;;  %v1202_v2 = vld [vmem:[#allocation2 + $0x8] sm:$0xf]  ;;  %s1756_s16 = smov 32   ;;  %v1282_v39 = vld [vmem:[#allocation9 + $0x8] sm:$0xff] }
  0xed   : > { %563 = vrot.lane.b32.xlu0 %v1197_v43, %s1755_s9  ;;  %v1191_v8 = vld [vmem:[#allocation2 + $0x8] sm:$0xf]  ;;  %s1757_s24 = smov 64   ;;  %v1245_v17 = vld [vmem:[#allocation2 + $0x4] sm:$0xf]  ;;  %v1281_v40 = vld [vmem:[#allocation9] sm:$0xff] }
  0xee   : > { %v478_v47 = vsel %vm473_vm1, %v1187_v46, 0  ;;  %s1974_s13 = scalar_lea.vmem [#allocation2], %s1278_s2  ;;  %v1291_v18 = vld [vmem:[#allocation2 + $0xc] sm:$0xf0]  ;;  %v1225_v35 = vld [vmem:[#allocation2 + $0x4] sm:$0xf] }
  0xef   : > { %487 = vmatpush.bf16.xpose.msra.mxu0 %v478_v47  ;;  %v1246_v19 = vor.u32 %v1291_v18, %v1245_v17  ;;  %v1287_v36 = vld [vmem:[#allocation2 + $0xc] sm:$0xf0]  ;;  %s1267_s8 = sshll.u32 %s1732_s28, 3  ;;  %s2135_s4 = sld [smem:[#allocation29_spill]] }
  0xf0   : > { %v548_v48 = vld [vmem:[%s1974_s13] sm:$0xf]  ;;  %v1284_v3 = vld [vmem:[#allocation2 + $0x10] sm:$0xf0]  ;;  %v1226_v37 = vor.u32 %v1287_v36, %v1225_v35  ;;  %s979_s20 = sadd.s32 %s1728_s27, %s1267_s8  ;;  %s982_s6 = sshll.u32 %s1964_s19, 4  ;;  %s983_s6 = int_to_ptr.vmem [resolvable:$true] %s982_s6 }
  0xf1   : > { %v554_v49 = vunpack.c.l.b16 %v548_v48  ;;  %v463_v51 = vld [vmem:[%s1974_s13] sm:$0xf]  ;;  %v1203_v4 = vor.u32 %v1284_v3, %v1202_v2  ;;  %v1280_v9 = vld [vmem:[#allocation2 + $0x10] sm:$0xf0]  ;;  %s1268_s18 = sshll.u32 %s979_s20, 3  ;;  %s953_s10 = scalar_lea.sflag [#allocation13], %s1958_s5 }
  0xf2   : > { %v819_v5 = vld [vmem:[%s1974_s13] sm:$0xf]  ;;  %v1192_v10 = vor.u32 %v1280_v9, %v1191_v8 }
  0xf3   : > { %v555_v50 = vpack.c.b16 %v554_v49, %v554_v49  ;;  %v825_v6 = vunpack.c.l.b16 %v819_v5  ;;  %v697_v11 = vld [vmem:[%s1974_s13] sm:$0xf] }
  0xf4   : > { %537 = vmatpush.bf16.msra.mxu1 %v1192_v10  ;;  %v703_v12 = vunpack.c.l.b16 %v697_v11 }
  0xf5   : > { %556 = vrot.lane.b32.xlu0 %v555_v50, %s1755_s9  ;;  %v826_v7 = vpack.c.b16 %v825_v6, %v825_v6  ;;  %s981_s29 = scalar_lea.hbm %s2135_s4, %s1268_s18 }
  0xf6   : > { %1188 = vmatmul.msk.bf16.vlgmr.msra.gmra.mxu0 %vm473_vm1, %v463_v51  ;;  %v704_v13 = vpack.c.b16 %v703_v12, %v703_v12  ;;  %v1231_v12 = vld [vmem:[#allocation2 + $0x8] sm:$0xf]  ;;  %s984_s11 = sshll.u32 %s981_s29, 4  ;;  %s985_s11 = int_to_ptr.hbm [resolvable:$true] %s984_s11 }
  0xf7   : > { %s1596_s15 = sshra.s32 %s985_s11, 4  ;;  %s1597_s15 = int_to_ptr.hbm [resolvable:$true] %s1596_s15 }
  0xf8   : > { %p1603_p2 = scmp.lt.s32.totalorder %s1597_s15, %s2135_s4 }
  0xfd   : > { %617 = vrot.lane.b32.xlu0 %v1203_v4, %s1755_s9  ;;  %s1598_s9 = scalar_lea.hbm %s1597_s15, 32 }
  0xfe   : > { %p1599_p1 = scmp.ne.s32.totalorder %s1597_s15, %s1598_s9 }
 0x100   : > { %p1600_p11 = pnand %p1599_p1, %p1866_p6 }
 0x102   : > { %p1601_p0 = pneg %p1600_p11 }
 0x105   : > { %827 = vrot.lane.b32.xlu0 %v826_v7, %s1756_s16 }
 0x10d   : > { %705 = vrot.lane.b32.xlu0 %v704_v13, %s1757_s24  ;;  %v1288_v13 = vld [vmem:[#allocation2 + $0x10] sm:$0xf0] }
 0x15f   : > { %v564_v52 = vpop.permute.xlu0 %563 }
 0x160   : > { %v569_v53 = vsel %vm473_vm1, %v564_v52, 0 }
 0x161   : > { %578 = vmatpush.bf16.xpose.msra.mxu2 %v569_v53 }
 0x167   : > { %v557_v54 = vpop.permute.xlu0 %556 }
 0x168   : > { %1198 = vmatmul.msk.bf16.vlgmr.msra.gmra.mxu2 %vm473_vm1, %v557_v54 }
 0x16f   : > { %v618_v38 = vpop.permute.xlu0 %617 }
 0x170   : > { %630 = vmatpush.bf16.msra.mxu3 %v618_v38 }
 0x173   : > { %v489_v55 = vpop.f32.mrf.mxu0 }
 0x174   : > { %v494_v56 = vsel %vm493_vm2, %v489_v55, -inf  ;;  %690 = vmatpush.bf16.msrb.mxu3 %v1282_v39 }
 0x175   : > { %495 = vmax.xlane.f32.xlu1 %v494_v56 }
 0x177   : > { %v828_v42 = vpop.permute.xlu0 %827 }
 0x178   : > { %691 = vmatpush.bf16.msrb.mxu3 %v1281_v40 }
 0x17b   : > { %v491_v57 = vpop.f32.mrf.mxu0 }
 0x17f   : > { %v706_v52 = vpop.permute.xlu0 %705 }
 0x1e8   : > { %v496_v58 = vpop.xlane.xlu1 %495 }
 0x1e9   : > { %v497_v59 = vsub.f32 %v489_v55, %v496_v58 }
 0x1eb   : > { %v498_v60 = vmul.f32 1.442695, %v497_v59  ;;  %v580_v61 = vpop.f32.mrf.mxu2 }
 0x1ec   : > { %v584_v62 = vsel %vm493_vm2, %v580_v61, -inf }
 0x1ed   : > { %1446 = vpow2.f32 %v498_v60  ;;  %585 = vmax.xlane.f32.xlu2 %v584_v62 }
 0x1f3   : > { %v1447_v63 = vpop.eup %1446  ;;  %v582_v0 = vpop.f32.mrf.mxu2 }
 0x1f4   : > { %v500_v1 = vsel %vm493_vm2, %v1447_v63, 0.0  ;;  %v1285_v0 = vld [vmem:[#allocation9 + $0x10] sm:$0xff] }
 0x1f5   : > { %501 = vadd.xlane.f32.xlu1 %v500_v1 }
 0x20e   : > { %834 = vrot.lane.b32.xlu1 %v1246_v19, %s1756_s16 }
 0x260   : > { %v586_v14 = vpop.xlane.xlu2 %585 }
 0x261   : > { %v587_v15 = vsub.f32 %v580_v61, %v586_v14  ;;  %v1232_v14 = vor.u32 %v1288_v13, %v1231_v12 }
 0x263   : > { %v588_v16 = vmul.f32 1.442695, %v587_v15 }
 0x265   : > { %1448 = vpow2.f32 %v588_v16 }
 0x268   : > { %v502_v20 = vpop.xlane.xlu1 %501 }
 0x269   : > { %1450 = vrcp.f32 %v502_v20  ;;  %v514_v26 = vand.u32 2147483648, %v502_v20  ;;  %v512_v28 = vand.u32 2147483647, %v502_v20  ;;  %vm508_vm4 = vweird.f32 %v502_v20 }
 0x26b   : > { %v1449_v21 = vpop.eup %1448  ;;  %v515_v30 = vor.u32 1.1754944e-38, %v514_v26  ;;  %vm513_vm6 = vcmp.eq.f32.partialorder %v512_v28, 8.507059e+37 }
 0x26c   : > { %v590_v22 = vsel %vm493_vm2, %v1449_v21, 0.0 }
 0x26d   : > { %591 = vadd.xlane.f32.xlu2 %v590_v22  ;;  %v1251_v22 = vld [vmem:[#allocation2 + $0x8] sm:$0xf] }
 0x26f   : > { %v1451_v23 = vpop.eup %1450 }
 0x270   : > { %v504_v24 = vmul.f32 %v1451_v23, %v502_v20  ;;  %vm509_vm3 = vweird.f32 %v1451_v23 }
 0x271   : > { %vm510_vm5 = vmor %vm508_vm4, %vm509_vm3 }
 0x272   : > { %v505_v25 = vsub.f32 1.0, %v504_v24 }
 0x274   : > { %v506_v27 = vmul.f32 %v1451_v23, %v505_v25 }
 0x276   : > { %v507_v29 = vadd.f32 %v1451_v23, %v506_v27 }
 0x278   : > { %v511_v31 = vsel %vm510_vm5, %v1451_v23, %v507_v29  ;;  %v1292_v23 = vld [vmem:[#allocation2 + $0x10] sm:$0xf0] }
 0x279   : > { %v516_v32 = vsel %vm513_vm6, %v515_v30, %v511_v31  ;;  %v1252_v24 = vor.u32 %v1292_v23, %v1251_v22 }
 0x27a   : > { %v518_v33 = vmul.f32 %v1447_v63, %v516_v32  ;;  %v1286_v63 = vld [vmem:[#allocation9 + $0x18] sm:$0xff] }
 0x27b   : > { %662 = vmatpush.bf16.msrb.mxu1 %v1286_v63 }
 0x27c   : > { %519 = vst.msk [vmem:[%s1964_s19] sm:$0xff] %vm493_vm2, %v518_v33  ;;  %v520_v34 = vpack.c.bf16 %v518_v33, %v518_v33 }
 0x27e   : > { %1193 = vmatmul.msk.bf16.vlgmr.msra.gmra.mxu1 %vm493_vm2, %v520_v34 }
 0x27f   : > { %663 = vmatpush.bf16.msrb.mxu1 %v1285_v0 }
 0x280   : > { %v835_v56 = vpop.permute.xlu1 %834 }
 0x281   : > { %v840_v59 = vsel %vm473_vm1, %v835_v56, 0 }
 0x285   : > { %712 = vrot.lane.b32.xlu2 %v1226_v37, %s1757_s24 }
 0x2e0   : > { %v592_v41 = vpop.xlane.xlu2 %591 }
 0x2e1   : > { %1452 = vrcp.f32 %v592_v41  ;;  %v604_v48 = vand.u32 2147483648, %v592_v41  ;;  %v602_v50 = vand.u32 2147483647, %v592_v41  ;;  %vm598_vm8 = vweird.f32 %v592_v41 }
 0x2e3   : > { %v605_v53 = vor.u32 1.1754944e-38, %v604_v48  ;;  %vm603_vm10 = vcmp.eq.f32.partialorder %v602_v50, 8.507059e+37 }
 0x2e7   : > { %v1453_v43 = vpop.eup %1452 }
 0x2e8   : > { %v594_v44 = vmul.f32 %v1453_v43, %v592_v41  ;;  %v713_v45 = vpop.permute.xlu2 %712  ;;  %vm599_vm7 = vweird.f32 %v1453_v43 }
 0x2e9   : > { %v718_v46 = vsel %vm473_vm1, %v713_v45, 0  ;;  %vm600_vm9 = vmor %vm598_vm8, %vm599_vm7  ;;  %v1290_v45 = vld [vmem:[#allocation9 + $0x28] sm:$0xff] }
 0x2ea   : > { %v595_v47 = vsub.f32 1.0, %v594_v44  ;;  %727 = vmatpush.bf16.xpose.msrb.mxu0 %v718_v46  ;;  %811 = vmatpush.bf16.msra.mxu1 %v1290_v45 }
 0x2ec   : > { %v596_v49 = vmul.f32 %v1453_v43, %v595_v47 }
 0x2ee   : > { %v597_v51 = vadd.f32 %v1453_v43, %v596_v49 }
 0x2f0   : > { %v601_v54 = vsel %vm600_vm9, %v1453_v43, %v597_v51 }
 0x2f1   : > { %1227 = vmatmul.msk.bf16.vlgmr.msrb.gmra.mxu0 %vm473_vm1, %v706_v52  ;;  %v606_v55 = vsel %vm603_vm10, %v605_v53, %v601_v54 }
 0x2f2   : > { %v608_v57 = vmul.f32 %v1449_v21, %v606_v55 }
 0x2f4   : > { %1199 = vst.msk [vmem:[%s1964_s19 + $0x8] sm:$0xff] %vm493_vm2, %v608_v57  ;;  %v611_v58 = vpack.c.bf16 %v608_v57, %v608_v57 }
 0x2f6   : > { %1204 = vmatmul.msk.bf16.vlgmr.msra.gmra.mxu3 %vm493_vm2, %v611_v58 }
 0x2f7   : > { %849 = vmatpush.bf16.xpose.msra.mxu3 %v840_v59  ;;  %v1289_v59 = vld [vmem:[#allocation9 + $0x20] sm:$0xff] }
 0x2f8   : > { %812 = vmatpush.bf16.msra.mxu1 %v1289_v59 }
 0x2fb   : > { %v539_v60 = vpop.f32.mrf.mxu1 }
 0x2fc   : > { %v543_v62 = vpack.c.bf16 %v539_v60, %v539_v60  ;;  %v1294_v60 = vld [vmem:[#allocation9 + $0x38] sm:$0xff] }
 0x303   : > { %v541_v61 = vpop.f32.mrf.mxu1 }
 0x304   : > { %v1293_v61 = vld [vmem:[#allocation9 + $0x30] sm:$0xff] }
 0x306   : > { %1222 = vmatmul.msk.bf16.vlgmr.msrb.gmra.mxu3 %vm473_vm1, %v543_v62 }
 0x316   : > { %1247 = vmatmul.msk.bf16.vlgmr.msra.gmra.mxu3 %vm473_vm1, %v828_v42 }
 0x36e   : > { %v729_v1 = vpop.f32.mrf.mxu0 }
 0x36f   : > { %v733_v2 = vsel %vm493_vm2, %v729_v1, -inf }
 0x370   : > { %734 = vmax.xlane.f32.xlu0 %v733_v2 }
 0x376   : > { %v731_v3 = vpop.f32.mrf.mxu0 }
 0x379   : > { %v632_v4 = vpop.f32.mrf.mxu3 }
 0x37a   : > { %v636_v5 = vpack.c.bf16 %v632_v4, %v632_v4 }
 0x37c   : > { %1213 = vmatmul.msk.bf16.vlgmr.msrb.gmra.mxu1 %vm473_vm1, %v636_v5 }
 0x381   : > { %v634_v6 = vpop.f32.mrf.mxu3 }
 0x384   : > { %766 = vrot.lane.b32.xlu0 %v1232_v14, %s1757_s24 }
 0x389   : > { %v2006_v7 = vpop.f32.mrf.mxu3 }
 0x391   : > { %v695_v8 = vpop.f32.mrf.mxu3 }
 0x399   : > { %v851_v9 = vpop.f32.mrf.mxu3 }
 0x39a   : > { %v855_v10 = vsel %vm493_vm2, %v851_v9, -inf }
 0x39b   : > { %856 = vmax.xlane.f32.xlu2 %v855_v10 }
 0x3a1   : > { %v853_v11 = vpop.f32.mrf.mxu3 }
 0x3e3   : > { %v735_v15 = vpop.xlane.xlu0 %734 }
 0x3e4   : > { %v736_v16 = vsub.f32 %v729_v1, %v735_v15 }
 0x3e6   : > { %v737_v17 = vmul.f32 1.442695, %v736_v16 }
 0x3e8   : > { %1454 = vpow2.f32 %v737_v17 }
 0x3ee   : > { %v1455_v18 = vpop.eup %1454 }
 0x3ef   : > { %v739_v19 = vsel %vm493_vm2, %v1455_v18, 0.0 }
 0x3f0   : > { %740 = vadd.xlane.f32.xlu1 %v739_v19 }
 0x3f6   : > { %v767_v30 = vpop.permute.xlu0 %766 }
 0x3f7   : > { %779 = vmatpush.bf16.msrb.mxu2 %v767_v30 }
 0x3f9   : > { %v2011_v20 = vpop.f32.mrf.mxu1 }
 0x3fb   : > { %933 = vmatpush.bf16.msra.mxu2 %v1294_v60 }
 0x3ff   : > { %934 = vmatpush.bf16.msra.mxu2 %v1293_v61 }
 0x401   : > { %v667_v21 = vpop.f32.mrf.mxu1 }
 0x409   : > { %888 = vrot.lane.b32.xlu1 %v1252_v24, %s1756_s16  ;;  %s1602_s16 = scalar_lea.hbm %s2135_s4, 128 }
 0x40a   : > { %p1604_p3 = scmp.lt.s32.totalorder %s1602_s16, %s1598_s9 }
 0x40c   : > { %p1605_p5 = por %p1604_p3, %p1603_p2 }
 0x40e   : > { %v857_v25 = vpop.xlane.xlu2 %856  ;;  %p1606_p7 = pnand %p1605_p5, %p1601_p0 }
 0x40f   : > { %v858_v26 = vsub.f32 %v851_v9, %v857_v25 }
 0x411   : > { %v859_v27 = vmul.f32 1.442695, %v858_v26 }
 0x413   : > { %1456 = vpow2.f32 %v859_v27 }
 0x419   : > { %v1457_v28 = vpop.eup %1456 }
 0x41a   : > { %v861_v29 = vsel %vm493_vm2, %v1457_v28, 0.0 }
 0x41b   : > { %862 = vadd.xlane.f32.xlu2 %v861_v29 }
 0x463   : > { %v741_v31 = vpop.xlane.xlu1 %740 }
 0x464   : > { %1458 = vrcp.f32 %v741_v31  ;;  %v753_v35 = vand.u32 2147483648, %v741_v31  ;;  %v751_v37 = vand.u32 2147483647, %v741_v31  ;;  %vm747_vm12 = vweird.f32 %v741_v31 }
 0x466   : > { %v754_v39 = vor.u32 1.1754944e-38, %v753_v35  ;;  %vm752_vm14 = vcmp.eq.f32.partialorder %v751_v37, 8.507059e+37 }
 0x46a   : > { %v1459_v32 = vpop.eup %1458 }
 0x46b   : > { %v743_v33 = vmul.f32 %v1459_v32, %v741_v31  ;;  %vm748_vm11 = vweird.f32 %v1459_v32 }
 0x46c   : > { %vm749_vm13 = vmor %vm747_vm12, %vm748_vm11 }
 0x46d   : > { %v744_v34 = vsub.f32 1.0, %v743_v33 }
 0x46f   : > { %v745_v36 = vmul.f32 %v1459_v32, %v744_v34 }
 0x471   : > { %v746_v38 = vadd.f32 %v1459_v32, %v745_v36 }
 0x473   : > { %v750_v40 = vsel %vm749_vm13, %v1459_v32, %v746_v38 }
 0x474   : > { %v755_v41 = vsel %vm752_vm14, %v754_v39, %v750_v40 }
 0x475   : > { %v757_v42 = vmul.f32 %v1455_v18, %v755_v41 }
 0x477   : > { %1228 = vst.msk [vmem:[%s1964_s19 + $0x10] sm:$0xff] %vm493_vm2, %v757_v42  ;;  %v760_v43 = vpack.c.bf16 %v757_v42, %v757_v42 }
 0x479   : > { %1233 = vmatmul.msk.bf16.vlgmr.msrb.gmra.mxu2 %vm493_vm2, %v760_v43 }
 0x47b   : > { %v889_v44 = vpop.permute.xlu1 %888 }
 0x47c   : > { %901 = vmatpush.bf16.msra.mxu0 %v889_v44 }
 0x48e   : > { %v863_v46 = vpop.xlane.xlu2 %862 }
 0x48f   : > { %1460 = vrcp.f32 %v863_v46  ;;  %v875_v50 = vand.u32 2147483648, %v863_v46  ;;  %v873_v52 = vand.u32 2147483647, %v863_v46  ;;  %vm869_vm0 = vweird.f32 %v863_v46 }
 0x491   : > { %v876_v54 = vor.u32 1.1754944e-38, %v875_v50  ;;  %vm874_vm4 = vcmp.eq.f32.partialorder %v873_v52, 8.507059e+37 }
 0x495   : > { %v1461_v47 = vpop.eup %1460 }
 0x496   : > { %v865_v48 = vmul.f32 %v1461_v47, %v863_v46  ;;  %vm870_vm15 = vweird.f32 %v1461_v47 }
 0x497   : > { %vm871_vm3 = vmor %vm869_vm0, %vm870_vm15 }
 0x498   : > { %v866_v49 = vsub.f32 1.0, %v865_v48 }
 0x49a   : > { %v867_v51 = vmul.f32 %v1461_v47, %v866_v49 }
 0x49c   : > { %v868_v53 = vadd.f32 %v1461_v47, %v867_v51 }
 0x49e   : > { %v872_v55 = vsel %vm871_vm3, %v1461_v47, %v868_v53 }
 0x49f   : > { %v877_v56 = vsel %vm874_vm4, %v876_v54, %v872_v55 }
 0x4a0   : > { %v879_v57 = vmul.f32 %v1457_v28, %v877_v56 }
 0x4a2   : > { %1248 = vst.msk [vmem:[%s1964_s19 + $0x18] sm:$0xff] %vm493_vm2, %v879_v57  ;;  %v882_v58 = vpack.c.bf16 %v879_v57, %v879_v57 }
 0x4a4   : > { %1253 = vmatmul.msk.bf16.vlgmr.msra.gmra.mxu0 %vm493_vm2, %v882_v58 }
 0x4fc   : > { %v781_v62 = vpop.f32.mrf.mxu2 }
 0x4fd   : > { %v785_v63 = vpack.c.bf16 %v781_v62, %v781_v62 }
 0x4ff   : > { %1242 = vmatmul.msk.bf16.vlgmr.msra.gmra.mxu1 %vm473_vm1, %v785_v63 }
 0x504   : > { %v783_v0 = vpop.f32.mrf.mxu2 }
 0x521   : > { %v903_v1 = vpop.f32.mrf.mxu0 }
 0x522   : > { %v907_v2 = vpack.c.bf16 %v903_v1, %v903_v1 }
 0x524   : > { %1262 = vmatmul.msk.bf16.vlgmr.msra.gmra.mxu2 %vm473_vm1, %v907_v2 }
 0x529   : > { %v905_v3 = vpop.f32.mrf.mxu0 }
 0x52a   : > { %1609 = shalt.err (!%p1606_p7)
}
 0x52b   : > { %s1758_s19 = smov 128   ;;  %s1759_s20 = smov 256   ;;  %v694_v6 = vadd.f32 %v2006_v7, %v2011_v20 }
 0x52c   : > { %s1760_s18 = smov 8   ;;  %s1265_s21 = sshll.u32 %s1732_s28, 1 }
 0x52d   : > { %1310 = dma.vmem_to_hbm [thread:$0]  (%p1866_p6), %s983_s6, 512, %s985_s11, %s953_s10, %s1758_s19, %s1759_s20, %s1760_s18  }
 0x52e   : > { %s963_s3 = sadd.s32 %s1728_s27, %s1265_s21  ;;  %s2136_s2 = sld [smem:[#allocation28_spill]] }
 0x52f   : > { %s1266_s29 = sshll.u32 %s963_s3, 3  ;;  %s2137_s8 = sld [smem:[#allocation27_spill]] }
 0x530   : > { %s967_s6 = sshll.u32 %s1962_s14, 4  ;;  %s948_s27 = scalar_lea.sflag [#allocation5], %s1958_s5  ;;  %s968_s6 = int_to_ptr.vmem [resolvable:$true] %s967_s6 }
 0x534   : > { %s965_s13 = scalar_lea.hbm %s2136_s2, %s1266_s29  ;;  %s1630_s18 = scalar_lea.hbm %s2136_s2, 32 }
 0x535   : > { %v1445_v9 = vld [vmem:[%s2137_s8] ss:$0 sm:$0xff]  ;;  %s969_s11 = sshll.u32 %s965_s13, 4  ;;  %s970_s11 = int_to_ptr.hbm [resolvable:$true] %s969_s11 }
 0x536   : > { %s1624_s28 = sshra.s32 %s970_s11, 4  ;;  %s1625_s28 = int_to_ptr.hbm [resolvable:$true] %s1624_s28 }
 0x537   : > { %s1626_s10 = scalar_lea.hbm %s1625_s28, 8  ;;  %p1631_p13 = scmp.lt.s32.totalorder %s1625_s28, %s2136_s2 }
 0x538   : > { %p1627_p8 = scmp.ne.s32.totalorder %s1625_s28, %s1626_s10  ;;  %p1632_p4 = scmp.lt.s32.totalorder %s1630_s18, %s1626_s10 }
 0x53a   : > { %p1628_p9 = pnand %p1627_p8, %p1866_p6  ;;  %p1633_p1 = por %p1632_p4, %p1631_p13 }
 0x53c   : > { %p1629_p12 = pneg %p1628_p9 }
 0x53e   : > { %p1634_p11 = pnand %p1633_p1, %p1629_p12 }
 0x57c   : > { %v814_v4 = vpop.f32.mrf.mxu1 }
 0x57d   : > { %v818_v8 = vadd.f32 %v814_v4, %v694_v6 }
 0x584   : > { %v816_v5 = vpop.f32.mrf.mxu1 }
 0x5a7   : > { %v936_v10 = vpop.f32.mrf.mxu2 }
 0x5a8   : > { %v940_v11 = vadd.f32 %v936_v10, %v818_v8 }
 0x5aa   : > { %v945_v12 = vadd.f32 %v1445_v9, %v940_v11 }
 0x5ac   : > { %946 = vst [vmem:[%s1962_s14] sm:$0xff] %v945_v12 }
 0x5ad   : > { %1637 = shalt.err (!%p1634_p11)
}
 0x5ae   : > { %1309 = dma.vmem_to_hbm [thread:$0]  (%p1866_p6), %s968_s6, 128, %s970_s11, %s948_s27  }
 0x5af   : > { %v938_v7 = vpop.f32.mrf.mxu2 }
 0x5b0 PF: > { %s2138_s5 = sld [smem:[#allocation19_spill]]  ;;  %p1341_p0 = scmp.ge.s32.totalorder %s1744_s7, 2 }
 0x5b2   : > { %p1328_p2 = pnand %p1341_p0, %p1872_p10 }
 0x5b4   : > { %p1329_p3 = pneg %p1328_p2 }
 0x5b6   : > { %s999_s29 = sand.u32 1, %s2138_s5  }
 0x5b7   : > { %s1000_s15 = scalar_lea.sflag [#allocation5], %s999_s29 }
 0x5b8   : > { %1695 = dma.done.wait (%p1329_p3), %s1000_s15, 128  }
 0x5b9   : > { %1697 = vsyncadd (%p1329_p3), %s1000_s15, 4294967168  ;;  %s1010_s9 = scalar_lea.sflag [#allocation13], %s999_s29 }
 0x5ba   : > { %1699 = dma.done.wait (%p1329_p3), %s1010_s9, 512  }
 0x5bb   : > { %1701 = vsyncadd (%p1329_p3), %s1010_s9, 4294966784  ;;  %s28_s7 = sadd.s32 1, %s1744_s7   ;;  %s2140_s27 = sld [smem:[#allocation20_spill]] }
 0x5bc   : > { %p25_p5 = scmp.ge.s32.totalorder %s28_s7, 6   ;;  %s2141_s29 = sld [smem:[#allocation22_spill]] }
 0x5bd   : > { %s2142_s12 = sld [smem:[#allocation23_spill]]  ;;  %s2143_s21 = smov %s1708_s22 }
 0x5be   : > { %s2144_s22 = smov %s1712_s23  ;;  %s2145_s23 = smov %s1930_s1 }
 0x5bf   : > { %s2146_s24 = smov %s1720_s25  ;;  %s2147_s25 = smov %s1724_s26 }
 0x5c0   : > { %s2148_s26 = smov %s1927_s17  ;;  %s2149_s28 = smov %s1740_s30 }
 0x5c1   :  { %27 = sbr.rel (!%p25_p5) target bundleno = 20 (0x14), region = 122 }
 0x5c3   : > { %s2150_s30 = smov %s2142_s12 }
 0x5c6   :  { %1016 = vsyncpa [#allocation4], 1 }
 0x5c7   :  { %1018 = vsyncpa [#allocation4 + $0x1], 1 }
 0x5c8   :  { %1019 = vsyncpa [#allocation7], 1 }
 0x5c9   :  { %1020 = vsyncpa [#allocation10], 1 }
 0x5ca   :  { %1021 = vsyncpa [#allocation5], 1 }
 0x5cb   :  { %1023 = vsyncpa [#allocation5 + $0x1], 1 }
 0x5cc   :  { %1024 = vsyncpa [#allocation13], 1 }
 0x5cd   :  { %1026 = vsyncpa [#allocation13 + $0x1], 1 }

</bundles_post_ra>
